<compile_context>
chip_gen: v7x
topology: tpu7x:2x2x1
jax: 0.10.0
libtpu: 0.0.40
codegen_flags: <defaults>
</compile_context>

<pallas_src>
import math

import jax
import jax.numpy as jnp
from jax.experimental import pallas as pl
from jax.experimental.pallas import tpu as pltpu


def _inade_out_kernel(seg_ref, wcat_ref, bias_ref, gamma_ref, beta_ref):
    # seg_ref : (1, L, Pt)   segmap tile, pixels in the lane axis
    # wcat_ref: (1, L, 6F)   per-batch fused weights [Wz_n | Wa^T | Wb^T]
    # bias_ref: (2F, 1)      noise_affine bias (broadcast across lanes)
    s = seg_ref[0]                         # (L, Pt)
    w = wcat_ref[0]                        # (L, 6F)

    # Single fused matmul over the tiny L contraction -> (6F, Pt) on the MXU.
    out = jax.lax.dot_general(
        w, s,
        dimension_numbers=(((0,), (0,)), ((), ())),
        preferred_element_type=jnp.float32)

    nf = gamma_ref.shape[1]                # F
    f2 = 2 * nf

    z2 = out[:f2] + bias_ref[...]          # noise_affine(segmap-mixed z) + bias  (2F, Pt)
    a = out[f2:2 * f2]                     # a(segmap)                            (2F, Pt)
    b = out[2 * f2:]                       # b(segmap)                            (2F, Pt)
    actv = a * z2 + b                      # (2F, Pt)

    # gamma/beta split along sublanes (F is a multiple of 8) -> free.
    gamma_ref[0] = actv[:nf] + 1.0         # gamma.float() + 1
    beta_ref[0] = actv[nf:]                # beta


def class_inade_out(segmap, z, params, *, p_tile_max=2048):
    """segmap: (N, L, H, W) float32, z: (N, L, Cz) float32."""
    N, L, H, W = segmap.shape
    P = H * W
    Cz = z.shape[-1]
    F2 = params["w_a"].shape[0]
    F = F2 // 2
    F6 = 3 * F2

    # --- pixel tiling: lane-dense (multiple of 128), remainder handled by padding ---
    Pp = -(-P // 128) * 128
    if Pp <= p_tile_max:
        p_tile = Pp
    else:
        p_tile = p_tile_max                       # multiple of 128 by construction
        Pp = -(-P // p_tile) * p_tile
    grid_p = Pp // p_tile

    # segmap stays in its native (N, L, H*W) layout -> no HBM transpose pass.
    seg_flat = segmap.reshape(N, L, P)
    if Pp != P:
        seg_flat = jnp.pad(seg_flat, ((0, 0), (0, 0), (0, Pp - P)))

    # Conv2dLayer weight gains: noise_affine -> 1/sqrt(Cz); a -> 1 (overridden); b -> 1/sqrt(L).
    w_na_scaled = params["w_noise"] * (1.0 / math.sqrt(Cz))            # (2F, Cz)
    # Fold z into the noise weights per batch element (exact re-association):
    #   z2[p,f] = sum_l S[p,l] * (sum_c z[n,l,c] * Wna[f,c]) + bias[f]
    wz = jnp.einsum('nlc,fc->nlf', z, w_na_scaled)                     # (N, L, 2F)
    w_a_t = params["w_a"].T                                            # (L, 2F)
    w_b_t = (params["w_b"] * (1.0 / math.sqrt(L))).T                   # (L, 2F)
    wcat = jnp.concatenate(
        [wz,
         jnp.broadcast_to(w_a_t[None], (N, L, F2)),
         jnp.broadcast_to(w_b_t[None], (N, L, F2))], axis=-1)          # (N, L, 6F)
    bias = params["b_noise"].reshape(F2, 1).astype(jnp.float32)        # (2F, 1)

    gamma_flat, beta_flat = pl.pallas_call(
        _inade_out_kernel,
        out_shape=(jax.ShapeDtypeStruct((N, F, Pp), jnp.float32),
                   jax.ShapeDtypeStruct((N, F, Pp), jnp.float32)),
        grid_spec=pltpu.PrefetchScalarGridSpec(
            num_scalar_prefetch=0,
            grid=(N, grid_p),
            in_specs=[
                pl.BlockSpec((1, L, p_tile), lambda n, p: (n, 0, p)),  # segmap tile
                pl.BlockSpec((1, L, F6), lambda n, p: (n, 0, 0)),      # fused weights (per batch)
                pl.BlockSpec((F2, 1), lambda n, p: (0, 0)),            # noise_affine bias
            ],
            out_specs=[
                pl.BlockSpec((1, F, p_tile), lambda n, p: (n, 0, p)),  # gamma
                pl.BlockSpec((1, F, p_tile), lambda n, p: (n, 0, p)),  # beta
            ],
        ),
        compiler_params=pltpu.CompilerParams(
            dimension_semantics=("parallel", "parallel")),
    )(seg_flat, wcat, bias)

    # (N, F, P) -> (N, F, H, W) is a free reshape (slice only if P was padded).
    gamma = gamma_flat[:, :, :P].reshape(N, F, H, W)
    beta = beta_flat[:, :, :P].reshape(N, F, H, W)
    return gamma, beta


def _reference(segmap, z, params):
    """Pure-JAX reference mirroring the PyTorch forward."""
    N, L, H, W = segmap.shape
    Cz = z.shape[-1]
    F2 = params["w_a"].shape[0]
    F = F2 // 2
    z_p = jnp.transpose(z, (0, 2, 1))                                    # (N, Cz, L)
    z_map = jnp.einsum('ncl,nlhw->nchw', z_p, segmap)                    # (N, Cz, H, W)
    w_na = params["w_noise"] * (1.0 / math.sqrt(Cz))
    z2 = jnp.einsum('oc,nchw->nohw', w_na, z_map) + params["b_noise"][None, :, None, None]
    a = jnp.einsum('ol,nlhw->nohw', params["w_a"], segmap)
    b = jnp.einsum('ol,nlhw->nohw', params["w_b"] * (1.0 / math.sqrt(L)), segmap)
    actv = a * z2 + b
    return actv[:, :F] + 1.0, actv[:, F:]


if __name__ == "__main__":
    # Small shapes consistent with the module's forward.
    N, semantic_nc, num_features, z_channels = 2, 8, 16, 8
    H = W = 16

    key = jax.random.PRNGKey(0)
    k_seg, k_z, k_wa, k_wn = jax.random.split(key, 4)

    # soft semantic map (rows sum to 1 over classes, like a softened one-hot)
    segmap = jax.nn.softmax(
        jax.random.normal(k_seg, (N, semantic_nc, H, W), jnp.float32) * 3.0, axis=1)
    z = jax.random.normal(k_z, (N, semantic_nc, z_channels), jnp.float32)

    params = {
        # a: nn.init.normal_ (std=1), no bias, weight_gain forced to 1
        "w_a": jax.random.normal(k_wa, (num_features * 2, semantic_nc), jnp.float32),
        # b: nn.init.constant_(0.0), no bias
        "w_b": jnp.zeros((num_features * 2, semantic_nc), jnp.float32),
        # noise_affine: StyleGAN Conv2dLayer init -> randn weight, zero bias
        "w_noise": jax.random.normal(k_wn, (num_features * 2, z_channels), jnp.float32),
        "b_noise": jnp.zeros((num_features * 2,), jnp.float32),
    }

    gamma, beta = class_inade_out(segmap, z, params)
    jax.block_until_ready((gamma, beta))

    g_ref, b_ref = _reference(segmap, z, params)
    assert gamma.shape == (N, num_features, H, W) and beta.shape == (N, num_features, H, W)
    assert jnp.allclose(gamma, g_ref, atol=1e-4, rtol=1e-4)
    assert jnp.allclose(beta, b_ref, atol=1e-4, rtol=1e-4)

    print("KERNEL_OK")
</pallas_src>

<mosaic_0001>
module attributes {stable_mosaic.version = 11 : i64} {
  func.func @_inade_out_kernel(%arg0: i32, %arg1: i32, %arg2: memref<1x8x256xf32, #tpu.memory_space<vmem>>, %arg3: memref<1x8x96xf32, #tpu.memory_space<vmem>>, %arg4: memref<32x1xf32, #tpu.memory_space<vmem>>, %arg5: memref<1x16x256xf32, #tpu.memory_space<vmem>>, %arg6: memref<1x16x256xf32, #tpu.memory_space<vmem>>) attributes {dimension_semantics = [#tpu.dimension_semantics<parallel>, #tpu.dimension_semantics<parallel>], iteration_bounds = array<i64: 2, 1>, scalar_prefetch = 0 : i64, scratch_operands = 0 : i64, tpu.core_type = #tpu.core_type<tc>, window_params = [{transform_indices = @transform_0, window_bounds = array<i64: 1, 8, 256>}, {transform_indices = @transform_1, window_bounds = array<i64: 1, 8, 96>}, {pipeline_mode = #tpu.pipeline_mode<synchronous>, transform_indices = @transform_2, window_bounds = array<i64: 32, 1>}, {transform_indices = @transform_3, window_bounds = array<i64: 1, 16, 256>}, {transform_indices = @transform_4, window_bounds = array<i64: 1, 16, 256>}]} {
    %c0 = arith.constant 0 : index
    %c0_0 = arith.constant 0 : index
    %c0_1 = arith.constant 0 : index
    %0 = vector.load %arg2[%c0, %c0_0, %c0_1] : memref<1x8x256xf32, #tpu.memory_space<vmem>>, vector<1x8x256xf32>
    %1 = vector.shape_cast %0 : vector<1x8x256xf32> to vector<8x256xf32>
    %c0_2 = arith.constant 0 : index
    %c0_3 = arith.constant 0 : index
    %c0_4 = arith.constant 0 : index
    %2 = vector.load %arg3[%c0_2, %c0_3, %c0_4] : memref<1x8x96xf32, #tpu.memory_space<vmem>>, vector<1x8x96xf32>
    %3 = vector.shape_cast %2 : vector<1x8x96xf32> to vector<8x96xf32>
    %cst = arith.constant dense<0.000000e+00> : vector<96x256xf32>
    %4 = tpu.matmul %3, %1, %cst {dimension_numbers = #tpu.dot_dimension_numbers<[0], [0], [1], [1], [0, 1, 1, 1], [], []>} : vector<8x96xf32>, vector<8x256xf32>, vector<96x256xf32> -> vector<96x256xf32>
    %5 = vector.extract_strided_slice %4 {offsets = [0, 0], sizes = [32, 256], strides = [1, 1]} : vector<96x256xf32> to vector<32x256xf32>
    %c0_5 = arith.constant 0 : index
    %c0_6 = arith.constant 0 : index
    %6 = vector.load %arg4[%c0_5, %c0_6] : memref<32x1xf32, #tpu.memory_space<vmem>>, vector<32x1xf32>
    %7 = vector.broadcast %6 : vector<32x1xf32> to vector<32x256xf32>
    %8 = arith.addf %5, %7 : vector<32x256xf32>
    %9 = vector.extract_strided_slice %4 {offsets = [32, 0], sizes = [32, 256], strides = [1, 1]} : vector<96x256xf32> to vector<32x256xf32>
    %10 = vector.extract_strided_slice %4 {offsets = [64, 0], sizes = [32, 256], strides = [1, 1]} : vector<96x256xf32> to vector<32x256xf32>
    %11 = arith.mulf %9, %8 : vector<32x256xf32>
    %12 = arith.addf %11, %10 : vector<32x256xf32>
    %13 = vector.extract_strided_slice %12 {offsets = [0, 0], sizes = [16, 256], strides = [1, 1]} : vector<32x256xf32> to vector<16x256xf32>
    %cst_7 = arith.constant 1.000000e+00 : f32
    %14 = vector.broadcast %cst_7 : f32 to vector<16x256xf32>
    %15 = arith.addf %13, %14 : vector<16x256xf32>
    %c0_8 = arith.constant 0 : index
    %c0_9 = arith.constant 0 : index
    %c0_10 = arith.constant 0 : index
    %16 = vector.load %arg5[%c0_8, %c0_9, %c0_10] : memref<1x16x256xf32, #tpu.memory_space<vmem>>, vector<1x16x256xf32>
    %17 = vector.shape_cast %16 : vector<1x16x256xf32> to vector<16x256xf32>
    %18 = vector.shape_cast %15 : vector<16x256xf32> to vector<1x16x256xf32>
    tpu.vector_store %arg5[%c0_8, %c0_9, %c0_10], %18 {strides = array<i32>} : memref<1x16x256xf32, #tpu.memory_space<vmem>>, vector<1x16x256xf32>,
    %19 = vector.extract_strided_slice %12 {offsets = [16, 0], sizes = [16, 256], strides = [1, 1]} : vector<32x256xf32> to vector<16x256xf32>
    %c0_11 = arith.constant 0 : index
    %c0_12 = arith.constant 0 : index
    %c0_13 = arith.constant 0 : index
    %20 = vector.load %arg6[%c0_11, %c0_12, %c0_13] : memref<1x16x256xf32, #tpu.memory_space<vmem>>, vector<1x16x256xf32>
    %21 = vector.shape_cast %20 : vector<1x16x256xf32> to vector<16x256xf32>
    %22 = vector.shape_cast %19 : vector<16x256xf32> to vector<1x16x256xf32>
    tpu.vector_store %arg6[%c0_11, %c0_12, %c0_13], %22 {strides = array<i32>} : memref<1x16x256xf32, #tpu.memory_space<vmem>>, vector<1x16x256xf32>,
    return
  }
  func.func @transform_0(%arg0: i32, %arg1: i32) -> (i32, i32, i32) {
    %c0_i32 = arith.constant 0 : i32
    %c0_i32_0 = arith.constant 0 : i32
    return %arg0, %c0_i32, %arg1 : i32, i32, i32
  }
  func.func @transform_1(%arg0: i32, %arg1: i32) -> (i32, i32, i32) {
    %c0_i32 = arith.constant 0 : i32
    %c0_i32_0 = arith.constant 0 : i32
    %c0_i32_1 = arith.constant 0 : i32
    return %arg0, %c0_i32, %c0_i32_0 : i32, i32, i32
  }
  func.func @transform_2(%arg0: i32, %arg1: i32) -> (i32, i32) {
    %c0_i32 = arith.constant 0 : i32
    %c0_i32_0 = arith.constant 0 : i32
    %c0_i32_1 = arith.constant 0 : i32
    return %c0_i32, %c0_i32_0 : i32, i32
  }
  func.func @transform_3(%arg0: i32, %arg1: i32) -> (i32, i32, i32) {
    %c0_i32 = arith.constant 0 : i32
    %c0_i32_0 = arith.constant 0 : i32
    return %arg0, %c0_i32, %arg1 : i32, i32, i32
  }
  func.func @transform_4(%arg0: i32, %arg1: i32) -> (i32, i32, i32) {
    %c0_i32 = arith.constant 0 : i32
    %c0_i32_0 = arith.constant 0 : i32
    return %arg0, %c0_i32, %arg1 : i32, i32, i32
  }
}

</mosaic_0001>

<bundles_post_ra>
// kernel: tpu_custom_call.1
= control target key start
LH: loop header
LB: loop body
LE: loop exit
PB: predicated region body
PF: predicated region fallthrough
CT: control target
= control target key end

     0   :  { %10 = vsyncpa [#allocation3], 0  ;;  %s1271_s0 = inlined_call_operand.vmem [shape: f32[2,8,256], index: 0, kind: input, shape index: {}]   ;;  %s1272_s1 = inlined_call_operand.hbm [shape: f32[2,8,96], index: 1, kind: input, shape index: {}]   ;;  %s1273_s2 = inlined_call_operand.vmem [shape: f32[32,1], index: 2, kind: input, shape index: {}]   ;;  %s1274_s3 = inlined_call_operand.hbm [shape: f32[2,16,256], index: 3, kind: output, shape index: {0}]   ;;  %s1275_s4 = inlined_call_operand.hbm [shape: f32[2,16,256], index: 4, kind: output, shape index: {1}]  }
   0x1   :  { %12 = vsyncpa [#allocation3 + $0x1], 0 }
   0x2   :  { %13 = vsyncpa [#allocation4], 0 }
   0x3   :  { %15 = vsyncpa [#allocation4 + $0x1], 0 }
   0x4   :  { %16 = vsyncpa [#allocation7], 0 }
   0x5   :  { %18 = vsyncpa [#allocation7 + $0x1], 0  ;;  %s1011_s15 = smov 0   ;;  %s1013_s16 = smov 0  }
   0x6   :  { %s1015_s17 = smov 0   ;;  %s1017_s18 = smov 0  }
   0x7   :  { %s1019_s19 = smov 0   ;;  %s1021_s20 = smov 0  }
   0x8 LB: > { %s723_s21 = sadd.s32 4294967295, %s977_s20   ;;  %s724_s22 = sadd.s32 4294967294, %s977_s20   ;;  %s977_s20 = sphi %s1021_s20, %s24_s20   ;;  %s973_s19 = sphi %s1019_s19, %s1291_s19   ;;  %s969_s18 = sphi %s1017_s18, %s1290_s18   ;;  %s965_s17 = sphi %s1015_s17, %s1289_s17   ;;  %s961_s16 = sphi %s1013_s16, %s1288_s16   ;;  %s957_s15 = sphi %s1011_s15, %s1287_s15  }
   0x9   : > { %s36_s23 = sadd.s32 1, %s973_s19  ;;  %s71_s24 = sadd.s32 1, %s965_s17 }
   0xa   : > { %p38_p0 = scmp.ge.s32.totalorder %s36_s23, 2  ;;  %p78_p1 = scmp.ne.s32.totalorder %s965_s17, %s961_s16 }
   0xb   : > { %p79_p2 = scmp.eq.s32.totalorder %s977_s20, 0  ;;  %p84_p3 = scmp.ne.s32.totalorder %s961_s16, %s957_s15 }
   0xc   : > { %s1293_s23 = smov (%p38_p0, %s36_s23), 0  ;;  %p85_p5 = scmp.eq.s32.totalorder %s723_s21, 0 }
   0xd   : > { %p1052_p4 = por %p79_p2, %p78_p1  ;;  %s68_s26 = ssub.s32 %s973_s19, %s1293_s23 }
   0xe   : > { %p131_p6 = scmp.eq.s32.totalorder %s723_s21, 1  ;;  %p69_p7 = scmp.eq.s32.totalorder %s68_s26, 0 }
   0xf   : > { %p1058_p8 = por %p85_p5, %p84_p3  ;;  %p137_p10 = scmp.eq.s32.totalorder %s724_s22, 1 }
  0x10   : > { %p1062_p9 = por %p131_p6, %p78_p1  ;;  %p777_p13 = scmp.lt.s32.totalorder %s977_s20, 2 }
  0x11   : > { %s1067_s29 = scalar_select %p69_p7, %s965_s17, %s71_s24  }
  0x12   : > { %s1279_s28 = scalar_select %p1062_p9, 1, 0 }
  0x13   : > { %p1069_p11 = por %p137_p10, %p84_p3  ;;  %s201_s5 = sand.u32 1, %s965_s17  }
  0x14   : > { %s727_s6 = sshll.u32 %s201_s5, 3  ;;  %s728_s7 = sshll.u32 %s973_s19, 7 }
  0x15   : > { %s1280_s30 = scalar_select %p1069_p11, 1, 0 }
  0x16   : > { %s1080_s10 = scalar_lea.hbm %s1272_s1, %s728_s7  ;;  %s205_s11 = scalar_lea.vmem [#allocation2], %s727_s6 }
  0x17   : > { %s212_s12 = sshll.u32 %s205_s11, 4  ;;  %p1086_p0 = pnand %p777_p13, %p1052_p4  ;;  %s1082_s12 = int_to_ptr.vmem [resolvable:$true] %s212_s12 }
  0x18   : > { %s202_s14 = scalar_lea.sflag [#allocation3], %s201_s5  ;;  %s833_s21 = scalar_lea.hbm %s1080_s10, 128 }
  0x19   : > { %p834_p3 = scmp.ne.s32.totalorder %s1080_s10, %s833_s21  ;;  %p835_p5 = pneg %p1086_p0 }
  0x1a   : > { %s838_s25 = scalar_lea.hbm %s1272_s1, 256  ;;  %p839_p4 = scmp.lt.u32.totalorder %s1080_s10, %s1272_s1 }
  0x1b   : > { %p836_p6 = pnand %p835_p5, %p834_p3  ;;  %p840_p10 = scmp.lt.u32.totalorder %s838_s25, %s833_s21 }
  0x1c   : > { %p842_p12 = scmp.lt.u32.totalorder %s833_s21, %s1080_s10 }
  0x1d   : > { %p837_p7 = pneg %p836_p6  ;;  %p841_p13 = por %p840_p10, %p839_p4 }
  0x1f   : > { %p843_p1 = por %p842_p12, %p841_p13 }
  0x21   : > { %p844_p2 = pnand %p843_p1, %p837_p7 }
  0x23   : > { %847 = shalt.err (!%p844_p2)
}
  0x24   : > { %s848_s5 = scalar_lea.vmem %s1082_s12, 128  ;;  %s979_s7 = smov [#allocation2]  }
  0x25   : > { %p849_p3 = scmp.ne.s32.totalorder %s1082_s12, %s848_s5  ;;  %s853_s8 = sshll.u32 %s979_s7, 4  ;;  %s854_s8 = int_to_ptr.vmem [resolvable:$false] %s853_s8 }
  0x26   : > { %s855_s9 = scalar_lea.vmem %s854_s8, 256  ;;  %p856_p9 = scmp.lt.s32.totalorder %s1082_s12, %s854_s8 }
  0x27   : > { %p851_p6 = pnand %p849_p3, %p835_p5  ;;  %p857_p4 = scmp.lt.s32.totalorder %s855_s9, %s848_s5 }
  0x29   : > { %p852_p11 = pneg %p851_p6  ;;  %p858_p10 = por %p857_p4, %p856_p9 }
  0x2b   : > { %p859_p12 = pnand %p858_p10, %p852_p11 }
  0x2d   : > { %862 = shalt.err (!%p859_p12)
}
  0x2e   : > { %769 = dma.hbm_to_vmem [thread:$0]  (!%p1086_p0), %s1080_s10, 128, %s1082_s12, %s202_s14  }
  0x2f   : > { %p1282_p1 = scmp.lt.s32.totalorder %s977_s20, 3  ;;  %p1283_p2 = scmp.ge.s32.totalorder %s977_s20, 1 }
  0x31   : > { %p218_p5 = pnand %p1283_p2, %p1282_p1 }
  0x32   : > { %s1122_s11 = sand.u32 (!%p218_p5), 1, %s961_s16  }
  0x33   : > { %221 = sbr.rel (%p218_p5) target bundleno = 482 (0x1e2), region = 32  ;;  %s730_s21 = sshll.u32 (!%p218_p5), %s1122_s11, 3 }
  0x34   : > { %s224_s22 = scalar_lea.sflag (!%p218_p5), [#allocation3], %s1122_s11  ;;  %s227_s24 = scalar_lea.vmem (!%p218_p5), [#allocation2], %s730_s21 }
  0x3a   : > { %944 = dma.done.wait (%p1058_p8), %s224_s22, 128  }
  0x3b   : > { %946 = vsyncadd (%p1058_p8), %s224_s22, 4294967168  ;;  %p267_p9 = scmp.lt.s32.totalorder %s969_s18, 1  ;;  %v980_v0 = vmov 0.0   ;;  %v280_v1 = vld [vmem:[%s227_s24] sm:$0xff]  ;;  %v981_v5 = vmov 0   ;;  %v489_v6 = vld [vmem:[%s1273_s2 + $0x10] sm:$0xff] }
  0x3c   : > { %414 = vmatprep.mubr.f32.mxu0 %v980_v0  ;;  %450 = vmatprep.mubr.f32.mxu1 %v980_v0  ;;  %v488_v4 = vld [vmem:[%s1273_s2 + $0x8] sm:$0xff]  ;;  %v490_v7 = vld [vmem:[%s1273_s2 + $0x18] sm:$0xff]  ;;  %v487_v8 = vld [vmem:[%s1273_s2] sm:$0xff]  ;;  %vm313_vm0 = vcmask 64512   ;;  %s731_s22 = sshll.u32 %s1122_s11, 5  ;;  %s548_s6 = scalar_lea.sflag [#allocation4], %s1122_s11 }
  0x3d   : > { %s268_s10 = scalar_select %p267_p9, %s969_s18, 1  ;;  %281 = vxpose.xlu0.b32.start.end [1/1] (short) (narrow) %v280_v1, 96  ;;  %832 = vset.pattern.permute.xlu1 %v981_v5 }
  0x3e   : > { %498 = vperm.xlu1 %832, %v488_v4   ;;  %s258_s24 = scalar_lea.vmem [#allocation5], %s731_s22  ;;  %s1174_s27 = scalar_lea.vmem [#allocation6], %s731_s22 }
  0x3f   : > { %s755_s12 = sshll.u32 %s268_s10, 4  ;;  %s568_s10 = sshll.u32 %s258_s24, 4  ;;  %s1165_s10 = int_to_ptr.vmem [resolvable:$true] %s568_s10 }
  0x40   : > { %s274_s25 = scalar_lea.vmem %s1271_s0, %s755_s12  ;;  %s756_s12 = sshll.u32 %s969_s18, 9 }
  0x41   : > { %v279_v2 = vld [vmem:[%s274_s25 + $0x8] sm:$0xff]  ;;  %v278_v3 = vld [vmem:[%s274_s25] sm:$0xff]  ;;  %s1172_s25 = scalar_lea.hbm %s1274_s3, %s756_s12  ;;  %s586_s26 = sshll.u32 %s1174_s27, 4  ;;  %s1208_s26 = int_to_ptr.vmem [resolvable:$true] %s586_s26 }
  0x42   : > { %350 = vmatprep.subr.mxu0 %v279_v2  ;;  %758 = vmatprep.subr.mxu1 %v279_v2  ;;  %s863_s5 = scalar_lea.vmem %s1165_s10, 512  ;;  %p1284_p11 = scmp.ne.s32.totalorder %s1279_s28, 0 }
  0x43   : > { %351 = vmatpush1.msra.mxu0 %v278_v3  ;;  %759 = vmatpush1.msra.mxu1 %v278_v3  ;;  %p864_p8 = scmp.ne.s32.totalorder %s1165_s10, %s863_s5  ;;  %s982_s7 = smov [#allocation5]  }
  0x44   : > { %503 = vperm.xlu1 %832, %v489_v6   ;;  %s867_s8 = sshll.u32 %s982_s7, 4  ;;  %s868_s8 = int_to_ptr.vmem [resolvable:$false] %s867_s8 }
  0x45   : > { %p865_p0 = pnand %p864_p8, %p1284_p11  ;;  %s869_s9 = scalar_lea.vmem %s868_s8, 1024 }
  0x46   : > { %p870_p13 = scmp.lt.s32.totalorder %s1165_s10, %s868_s8  ;;  %p871_p3 = scmp.lt.s32.totalorder %s869_s9, %s863_s5 }
  0x47   : > { %p866_p7 = pneg %p865_p0 }
  0x48   : > { %508 = vperm.xlu1 %832, %v490_v7   ;;  %p872_p6 = por %p871_p3, %p870_p13 }
  0x4a   : > { %p873_p4 = pnand %p872_p6, %p866_p7 }
  0x66   : > { %831 = vset.pattern.permute.xlu0 %v981_v5 }
  0x92   : > { %493 = vperm.xlu0 %831, %v487_v8  }
  0xbd   : > { %v297_v9 = vpop.trf.xlu0  ;;  %v499_v28 = vpop.permute.xlu1 %498 }
  0xbe   : > { %735 = vmatmul.mubr.msk.f32.vlgmr.msra.gmra.mrb[0].mxu0 %vm313_vm0, %v297_v9 }
  0xbf   : > { %420 = vmatprep.mubr.f32.mxu0 %v980_v0 }
  0xc1   : > { %v298_v10 = vpop.trf.xlu0 }
  0xc2   : > { %736 = vmatmul.mubr.msk.f32.gmra.mrb[2].mxu0 %vm313_vm0, %v298_v10 }
  0xc3   : > { %426 = vmatprep.mubr.f32.mxu0 %v980_v0  ;;  %v504_v36 = vpop.permute.xlu1 %503 }
  0xc5   : > { %v299_v11 = vpop.trf.xlu0 }
  0xc6   : > { %737 = vmatmul.mubr.msk.f32.gmra.mrb[4].mxu0 %vm313_vm0, %v299_v11 }
  0xc7   : > { %432 = vmatprep.mubr.f32.mxu0 %v980_v0  ;;  %v509_v46 = vpop.permute.xlu1 %508 }
  0xc9   : > { %v300_v12 = vpop.trf.xlu0 }
  0xca   : > { %738 = vmatmul.mubr.msk.f32.gmra.mrb[6].mxu0 %vm313_vm0, %v300_v12 }
  0xcb   : > { %438 = vmatprep.mubr.f32.mxu0 %v980_v0 }
  0xcd   : > { %v301_v13 = vpop.trf.xlu0 }
  0xce   : > { %739 = vmatmul.mubr.msk.f32.gmra.mrb[8].mxu0 %vm313_vm0, %v301_v13 }
  0xcf   : > { %444 = vmatprep.mubr.f32.mxu0 %v980_v0 }
  0xd1   : > { %v302_v14 = vpop.trf.xlu0 }
  0xd2   : > { %740 = vmatmul.mubr.msk.f32.gmra.mrb[10].mxu0 %vm313_vm0, %v302_v14 }
  0xd5   : > { %v303_v15 = vpop.trf.xlu0 }
  0xd6   : > { %741 = vmatmul.mubr.msk.f32.vlgmr.msra.gmra.mrb[0].mxu1 %vm313_vm0, %v303_v15 }
  0xd7   : > { %456 = vmatprep.mubr.f32.mxu1 %v980_v0 }
  0xd9   : > { %v304_v16 = vpop.trf.xlu0 }
  0xda   : > { %742 = vmatmul.mubr.msk.f32.gmra.mrb[2].mxu1 %vm313_vm0, %v304_v16 }
  0xdb   : > { %462 = vmatprep.mubr.f32.mxu1 %v980_v0 }
  0xdd   : > { %v305_v17 = vpop.trf.xlu0 }
  0xde   : > { %743 = vmatmul.mubr.msk.f32.gmra.mrb[4].mxu1 %vm313_vm0, %v305_v17 }
  0xdf   : > { %468 = vmatprep.mubr.f32.mxu1 %v980_v0 }
  0xe1   : > { %v306_v18 = vpop.trf.xlu0 }
  0xe2   : > { %744 = vmatmul.mubr.msk.f32.gmra.mrb[6].mxu1 %vm313_vm0, %v306_v18 }
  0xe3   : > { %474 = vmatprep.mubr.f32.mxu1 %v980_v0 }
  0xe5   : > { %v307_v19 = vpop.trf.xlu0 }
  0xe6   : > { %745 = vmatmul.mubr.msk.f32.gmra.mrb[8].mxu1 %vm313_vm0, %v307_v19 }
  0xe7   : > { %480 = vmatprep.mubr.f32.mxu1 %v980_v0 }
  0xe9   : > { %v308_v20 = vpop.trf.xlu0 }
  0xea   : > { %746 = vmatmul.mubr.msk.f32.gmra.mrb[10].mxu1 %vm313_vm0, %v308_v20 }
 0x111   : > { %v494_v27 = vpop.permute.xlu0 %493 }
 0x191   : > { %v416_v21 = vpop.f32.mrb[0].mxu0 }
 0x192   : > { %v418_v22 = vpop.f32.mrb[1].mxu0  ;;  %v511_v31 = vadd.f32 %v494_v27, %v416_v21 }
 0x193   : > { %v512_v32 = vadd.f32 %v494_v27, %v418_v22 }
 0x195   : > { %v422_v23 = vpop.f32.mrb[2].mxu0 }
 0x196   : > { %v424_v24 = vpop.f32.mrb[3].mxu0  ;;  %v513_v38 = vadd.f32 %v499_v28, %v422_v23 }
 0x197   : > { %v514_v39 = vadd.f32 %v499_v28, %v424_v24 }
 0x199   : > { %v428_v25 = vpop.f32.mrb[4].mxu0 }
 0x19a   : > { %v430_v26 = vpop.f32.mrb[5].mxu0  ;;  %v515_v44 = vadd.f32 %v504_v36, %v428_v25 }
 0x19b   : > { %v516_v45 = vadd.f32 %v504_v36, %v430_v26 }
 0x19d   : > { %v434_v29 = vpop.f32.mrb[6].mxu0 }
 0x19e   : > { %v436_v30 = vpop.f32.mrb[7].mxu0  ;;  %v517_v51 = vadd.f32 %v509_v46, %v434_v29 }
 0x19f   : > { %v518_v52 = vadd.f32 %v509_v46, %v436_v30 }
 0x1a1   : > { %v440_v33 = vpop.f32.mrb[8].mxu0 }
 0x1a2   : > { %v519_v34 = vmul.f32 %v511_v31, %v440_v33  ;;  %v442_v35 = vpop.f32.mrb[9].mxu0 }
 0x1a3   : > { %v520_v37 = vmul.f32 %v512_v32, %v442_v35 }
 0x1a5   : > { %v446_v40 = vpop.f32.mrb[10].mxu0 }
 0x1a6   : > { %v521_v41 = vmul.f32 %v513_v38, %v446_v40  ;;  %v448_v42 = vpop.f32.mrb[11].mxu0 }
 0x1a7   : > { %v522_v43 = vmul.f32 %v514_v39, %v448_v42 }
 0x1a9   : > { %v452_v47 = vpop.f32.mrb[0].mxu1 }
 0x1aa   : > { %v523_v48 = vmul.f32 %v515_v44, %v452_v47  ;;  %v454_v49 = vpop.f32.mrb[1].mxu1 }
 0x1ab   : > { %v524_v50 = vmul.f32 %v516_v45, %v454_v49 }
 0x1ad   : > { %v458_v53 = vpop.f32.mrb[2].mxu1 }
 0x1ae   : > { %v1159_v54 = vmul.f32 %v517_v51, %v458_v53  ;;  %v460_v55 = vpop.f32.mrb[3].mxu1 }
 0x1af   : > { %v1161_v56 = vmul.f32 %v518_v52, %v460_v55 }
 0x1b1   : > { %v464_v57 = vpop.f32.mrb[4].mxu1 }
 0x1b2   : > { %v527_v58 = vadd.f32 %v519_v34, %v464_v57  ;;  %v466_v59 = vpop.f32.mrb[5].mxu1 }
 0x1b3   : > { %v528_v60 = vadd.f32 %v520_v37, %v466_v59 }
 0x1b4   : > { %v535_v61 = vadd.f32 1.0, %v527_v58 }
 0x1b5   : > { %v536_v62 = vadd.f32 1.0, %v528_v60  ;;  %v470_v63 = vpop.f32.mrb[6].mxu1 }
 0x1b6   : > { %539 = vst [vmem:[%s258_s24] sm:$0xff] %v535_v61  ;;  %v529_v0 = vadd.f32 %v521_v41, %v470_v63  ;;  %v472_v1 = vpop.f32.mrb[7].mxu1 }
 0x1b7   : > { %540 = vst [vmem:[%s258_s24 + $0x8] sm:$0xff] %v536_v62  ;;  %v530_v2 = vadd.f32 %v522_v43, %v472_v1 }
 0x1b8   : > { %v537_v3 = vadd.f32 1.0, %v529_v0 }
 0x1b9   : > { %v538_v4 = vadd.f32 1.0, %v530_v2  ;;  %v476_v5 = vpop.f32.mrb[8].mxu1 }
 0x1ba   : > { %541 = vst [vmem:[%s258_s24 + $0x10] sm:$0xff] %v537_v3  ;;  %v531_v6 = vadd.f32 %v523_v48, %v476_v5  ;;  %v478_v7 = vpop.f32.mrb[9].mxu1 }
 0x1bb   : > { %542 = vst [vmem:[%s258_s24 + $0x18] sm:$0xff] %v538_v4  ;;  %v532_v8 = vadd.f32 %v524_v50, %v478_v7 }
 0x1bc   : > { %543 = vst [vmem:[%s1174_s27] sm:$0xff] %v531_v6 }
 0x1bd   : > { %876 = shalt.err (!%p873_p4)
}
 0x1be   : > { %s877_s21 = scalar_lea.hbm %s1172_s25, 512  ;;  %s881_s13 = scalar_lea.hbm %s1274_s3, 1024 }
 0x1bf   : > { %p878_p10 = scmp.ne.s32.totalorder %s1172_s25, %s877_s21  ;;  %p882_p2 = scmp.lt.u32.totalorder %s1172_s25, %s1274_s3 }
 0x1c0   : > { %p883_p5 = scmp.lt.u32.totalorder %s881_s13, %s877_s21  ;;  %p885_p8 = scmp.lt.u32.totalorder %s877_s21, %s1172_s25 }
 0x1c1   : > { %p879_p12 = pnand %p878_p10, %p1284_p11 }
 0x1c2   : > { %p884_p9 = por %p883_p5, %p882_p2 }
 0x1c3   : > { %p880_p1 = pneg %p879_p12 }
 0x1c4   : > { %p886_p0 = por %p885_p8, %p884_p9 }
 0x1c6   : > { %p887_p7 = pnand %p886_p0, %p880_p1 }
 0x1c8   : > { %890 = shalt.err (!%p887_p7)
}
 0x1c9   : > { %s983_s5 = smov 256   ;;  %s984_s8 = smov 16   ;;  %544 = vst [vmem:[%s1174_s27 + $0x8] sm:$0xff] %v532_v8  ;;  %v482_v9 = vpop.f32.mrb[10].mxu1 }
 0x1ca   : > { %762 = dma.vmem_to_hbm [thread:$0]  (%p1284_p11), %s1165_s10, 512, %s1172_s25, %s548_s6, %s983_s5, %s983_s5, %s984_s8   ;;  %v533_v10 = vadd.f32 %v1159_v54, %v482_v9  ;;  %v484_v11 = vpop.f32.mrb[11].mxu1 }
 0x1cb   : > { %v534_v12 = vadd.f32 %v1161_v56, %v484_v11  ;;  %s1217_s22 = scalar_lea.hbm %s1275_s4, %s756_s12  ;;  %s553_s10 = scalar_lea.sflag [#allocation7], %s1122_s11 }
 0x1cc   : > { %545 = vst [vmem:[%s1174_s27 + $0x10] sm:$0xff] %v533_v10  ;;  %s891_s25 = scalar_lea.vmem %s1208_s26, 512  ;;  %s985_s6 = smov [#allocation6]  }
 0x1cd   : > { %546 = vst [vmem:[%s1174_s27 + $0x18] sm:$0xff] %v534_v12  ;;  %p892_p13 = scmp.ne.s32.totalorder %s1208_s26, %s891_s25  ;;  %s895_s24 = sshll.u32 %s985_s6, 4  ;;  %s896_s24 = int_to_ptr.vmem [resolvable:$false] %s895_s24 }
 0x1ce   : > { %s897_s13 = scalar_lea.vmem %s896_s24, 1024  ;;  %p898_p4 = scmp.lt.s32.totalorder %s1208_s26, %s896_s24 }
 0x1cf   : > { %p893_p3 = pnand %p892_p13, %p1284_p11  ;;  %p899_p10 = scmp.lt.s32.totalorder %s897_s13, %s891_s25 }
 0x1d1   : > { %p894_p6 = pneg %p893_p3  ;;  %p900_p12 = por %p899_p10, %p898_p4 }
 0x1d3   : > { %p901_p1 = pnand %p900_p12, %p894_p6 }
 0x1d5   : > { %904 = shalt.err (!%p901_p1)
}
 0x1d6   : > { %s905_s18 = scalar_lea.hbm %s1217_s22, 512  ;;  %s909_s14 = scalar_lea.hbm %s1275_s4, 1024 }
 0x1d7   : > { %p906_p2 = scmp.ne.s32.totalorder %s1217_s22, %s905_s18  ;;  %p910_p8 = scmp.lt.u32.totalorder %s1217_s22, %s1275_s4 }
 0x1d8   : > { %p911_p0 = scmp.lt.u32.totalorder %s909_s14, %s905_s18  ;;  %p913_p13 = scmp.lt.u32.totalorder %s905_s18, %s1217_s22 }
 0x1d9   : > { %p907_p5 = pnand %p906_p2, %p1284_p11 }
 0x1da   : > { %p912_p7 = por %p911_p0, %p910_p8 }
 0x1db   : > { %p908_p9 = pneg %p907_p5 }
 0x1dc   : > { %p914_p3 = por %p913_p13, %p912_p7 }
 0x1de   : > { %p915_p6 = pnand %p914_p3, %p908_p9 }
 0x1e0   : > { %918 = shalt.err (!%p915_p6)
}
 0x1e1   : > { %763 = dma.vmem_to_hbm [thread:$0]  (%p1284_p11), %s1208_s26, 512, %s1217_s22, %s553_s10, %s983_s5, %s983_s5, %s984_s8  }
 0x1e2 PF: > { %s601_s21 = sand.u32 1, %s957_s15   ;;  %p1285_p4 = scmp.ne.s32.totalorder %s1280_s30, 0 }
 0x1e3   : > { %p1286_p10 = scmp.ge.s32.totalorder %s977_s20, 2  ;;  %s602_s25 = scalar_lea.sflag [#allocation4], %s601_s21 }
 0x1e5   : > { %p771_p12 = pnand %p1286_p10, %p1285_p4 }
 0x1e7   : > { %948 = dma.done.wait (!%p771_p12), %s602_s25, 512  }
 0x1e8   : > { %950 = vsyncadd (!%p771_p12), %s602_s25, 4294966784  ;;  %s611_s28 = scalar_lea.sflag [#allocation7], %s601_s21 }
 0x1e9   : > { %952 = dma.done.wait (!%p771_p12), %s611_s28, 512  }
 0x1ea   : > { %954 = vsyncadd (!%p771_p12), %s611_s28, 4294966784  ;;  %s24_s20 = sadd.s32 1, %s977_s20   ;;  %s1287_s15 = smov %s961_s16 }
 0x1eb   : > { %p21_p1 = scmp.ge.s32.totalorder %s24_s20, 4   ;;  %s1288_s16 = smov %s965_s17 }
 0x1ec   : > { %s1289_s17 = smov %s1067_s29  ;;  %s1290_s18 = smov %s973_s19 }
 0x1ed   : > { %s1291_s19 = smov %s1293_s23  ;;  %23 = sbr.rel (!%p21_p1) target bundleno = 8 (0x8), region = 97 }
 0x1f4   :  { %616 = vsyncpa [#allocation3], 1 }
 0x1f5   :  { %618 = vsyncpa [#allocation3 + $0x1], 1 }
 0x1f6   :  { %619 = vsyncpa [#allocation4], 1 }
 0x1f7   :  { %621 = vsyncpa [#allocation4 + $0x1], 1 }
 0x1f8   :  { %622 = vsyncpa [#allocation7], 1 }
 0x1f9   :  { %624 = vsyncpa [#allocation7 + $0x1], 1 }

</bundles_post_ra>
